<compile_context>
chip_gen: v7x
topology: tpu7x:2x2x1
jax: 0.10.0
libtpu: 0.0.40
codegen_flags: <defaults>
</compile_context>

<pallas_src>
import jax
import jax.numpy as jnp
from jax.experimental import pallas as pl
from jax.experimental.pallas import tpu as pltpu


_LANE = 128
# 32-row granularity keeps f32 / bf16 / int8 sublane packing legal.
_ROW_ALIGN = 32
# ~2 MiB per tile: double-buffered in+out working set = 8 MiB, under the
# v5e 16 MiB scoped-VMEM default (and far under v6e/v7x defaults) while on
# the ~85%+ plateau of the measured tiled-copy HBM roofline curve.
_TARGET_TILE_BYTES = 2 * 1024 * 1024
# Keep at least this many grid blocks when tiling, so each of v7x's two
# TensorCores gets >= 2 pipelined steps (neutral on single-TC v5e/v6e).
_MIN_BLOCKS = 4


def _copy_kernel(x_ref, o_ref):
    # Identity copy of the current (block_rows, 128) tile.
    o_ref[...] = x_ref[...]


def _choose_block_rows(R, itemsize):
    """Pick a block row count from a per-tile byte budget (dtype-agnostic)."""
    budget_rows = (_TARGET_TILE_BYTES // (_LANE * itemsize)) // _ROW_ALIGN * _ROW_ALIGN
    budget_rows = max(budget_rows, _ROW_ALIGN)
    if R <= budget_rows:
        # Single full-extent block (block == full array dims is always legal).
        return R
    # Cap so the grid has at least _MIN_BLOCKS steps (v7x dual-TC pipelining).
    cap = (pl.cdiv(R, _MIN_BLOCKS) // _ROW_ALIGN) * _ROW_ALIGN
    cap = max(min(budget_rows, cap), _ROW_ALIGN)
    # Prefer a block size that divides R evenly -> no masked ragged tail.
    lo = max(cap // 2, _ROW_ALIGN)
    for br in range(cap, lo - 1, -_ROW_ALIGN):
        if R % br == 0:
            return br
    return cap  # ragged tail is masked by Pallas on writeback; still correct.


def _pallas_contiguous_copy(flat2d):
    """Materialized identity copy of a contiguous (R, 128) buffer."""
    R, C = flat2d.shape
    assert C == _LANE
    itemsize = jnp.dtype(flat2d.dtype).itemsize
    block_rows = _choose_block_rows(R, itemsize)
    grid = (pl.cdiv(R, block_rows),)
    nbytes = R * C * itemsize

    return pl.pallas_call(
        _copy_kernel,
        out_shape=jax.ShapeDtypeStruct((R, C), flat2d.dtype),
        grid_spec=pltpu.PrefetchScalarGridSpec(
            num_scalar_prefetch=0,
            grid=grid,
            in_specs=[pl.BlockSpec((block_rows, C), lambda i: (i, 0))],
            out_specs=pl.BlockSpec((block_rows, C), lambda i: (i, 0)),
        ),
        # "parallel": on v7x the row-grid is sharded across both TensorCores;
        # neutral (and safe) on single-TC v5e/v6e.
        compiler_params=pltpu.CompilerParams(
            dimension_semantics=("parallel",),
        ),
        # Pure copy: no flops, 2x bytes of HBM traffic.  Lets XLA overlap the
        # copy with surrounding ops.
        cost_estimate=pl.CostEstimate(
            flops=0, transcendentals=0, bytes_accessed=2 * nbytes),
    )(flat2d)


def _resolve_shape(shape, total):
    """Resolve a single -1 like torch.view and validate the element count."""
    shape = list(shape)
    if shape.count(-1) > 1:
        raise ValueError("only one dimension can be inferred (-1)")
    if -1 in shape:
        idx = shape.index(-1)
        known = 1
        for j, s in enumerate(shape):
            if j != idx:
                known *= s
        if known == 0 or total % known != 0:
            raise ValueError(
                f"cannot view array of {total} elements as shape {tuple(shape)}")
        shape[idx] = total // known
    shape = tuple(shape)
    prod = 1
    for s in shape:
        prod *= s
    if prod != total:
        raise ValueError(
            f"cannot view array of {total} elements as shape {shape}")
    return shape


def view_forward(x, shape, *, force_kernel=False):
    """Equivalent of torch `x.view(*shape)` (contiguous, row-major).

    Default path is metadata-only (like torch.view / jnp.reshape): no kernel,
    no HBM traffic.  `force_kernel=True` requests an explicitly materialized
    copy through the lane-dense Pallas identity-copy kernel (only possible
    when the element count is a multiple of 128; otherwise falls back to the
    metadata-only reshape).
    """
    total = x.size
    shape = _resolve_shape(shape, total)

    if not force_kernel or total % _LANE != 0 or total == 0:
        # torch.view is metadata-only; this is the hot (and default) path.
        return x.reshape(shape)

    flat2d = x.reshape(total // _LANE, _LANE)  # zero-cost for contiguous x
    copied = _pallas_contiguous_copy(flat2d)
    return copied.reshape(shape)               # zero-cost reshape to target


class View:
    """JAX/Pallas counterpart of the PyTorch `View` nn.Module."""

    def __init__(self, shape):
        self.shape = shape

    def __call__(self, x):
        return view_forward(x, self.shape)


if __name__ == "__main__":
    key = jax.random.PRNGKey(0)
    k1, k2, k3, k4 = jax.random.split(key, 4)

    # 1) Canonical small example: (2, 4, 16, 16) -> (2, 1024).
    #    Default path: metadata-only reshape, no kernel launch.
    x_small = jax.random.normal(k1, (2, 4, 16, 16), dtype=jnp.float32)
    mod = View((2, -1))
    ref_small = x_small.reshape(2, -1)
    y_small = jax.block_until_ready(mod(x_small))
    assert y_small.shape == ref_small.shape, (y_small.shape, ref_small.shape)
    assert y_small.dtype == ref_small.dtype
    assert bool(jnp.all(y_small == ref_small))

    # 2) Same small input, forcing the Pallas copy path (single full block,
    #    16 rows of 128 lanes).
    y_forced = jax.block_until_ready(
        view_forward(x_small, (2, -1), force_kernel=True))
    assert y_forced.shape == ref_small.shape
    assert bool(jnp.all(y_forced == ref_small))

    # 3) Forced-copy path exercising the multi-block grid with byte-budgeted
    #    tiles and even-divisor block selection (no ragged tail):
    #    4*9*160*128 = 737280 elems -> 5760 rows; f32 budget 4096 rows ->
    #    cap 1440 rows, 5760 % 1440 == 0 -> 4 blocks, unmasked writeback.
    x_big = jax.random.normal(k2, (4, 9, 160, 128), dtype=jnp.float32)
    ref_big = x_big.reshape(4, 9, -1)
    y_big = jax.block_until_ready(
        view_forward(x_big, (4, 9, -1), force_kernel=True))
    assert y_big.shape == ref_big.shape
    assert bool(jnp.all(y_big == ref_big))
    # Default path on the same tensor stays metadata-only and also matches.
    y_big_default = jax.block_until_ready(View((4, 9, -1))(x_big))
    assert bool(jnp.all(y_big_default == ref_big))

    # 4) bf16 forced kernel path (byte-budgeted tile -> same 2 MiB per tile
    #    as f32; here 1024 rows -> single full block), 131072 elems.
    x_bf16 = jax.random.normal(k3, (4, 64, 512), dtype=jnp.bfloat16)
    ref_bf16 = x_bf16.reshape(-1, 512)
    y_bf16 = jax.block_until_ready(
        view_forward(x_bf16, (-1, 512), force_kernel=True))
    assert y_bf16.shape == ref_bf16.shape and y_bf16.dtype == jnp.bfloat16
    assert bool(jnp.all(y_bf16 == ref_bf16))

    # 5) Non-lane-aligned total (not a multiple of 128): falls back cleanly.
    x_odd = jax.random.normal(k4, (3, 5, 7), dtype=jnp.float32)
    y_odd = jax.block_until_ready(View((5, -1))(x_odd))
    assert bool(jnp.all(y_odd == x_odd.reshape(5, -1)))

    print("KERNEL_OK")
</pallas_src>

<mosaic_0001>
module attributes {stable_mosaic.version = 11 : i64} {
  func.func @_copy_kernel(%arg0: i32, %arg1: memref<16x128xf32, #tpu.memory_space<vmem>>, %arg2: memref<16x128xf32, #tpu.memory_space<vmem>>) attributes {dimension_semantics = [#tpu.dimension_semantics<parallel>], iteration_bounds = array<i64: 1>, scalar_prefetch = 0 : i64, scratch_operands = 0 : i64, tpu.core_type = #tpu.core_type<tc>, window_params = [{transform_indices = @transform_0, window_bounds = array<i64: 16, 128>}, {transform_indices = @transform_1, window_bounds = array<i64: 16, 128>}]} {
    %c0 = arith.constant 0 : index
    %c0_0 = arith.constant 0 : index
    %0 = vector.load %arg1[%c0, %c0_0] : memref<16x128xf32, #tpu.memory_space<vmem>>, vector<16x128xf32>
    %c0_1 = arith.constant 0 : index
    %c0_2 = arith.constant 0 : index
    %1 = vector.load %arg2[%c0_1, %c0_2] : memref<16x128xf32, #tpu.memory_space<vmem>>, vector<16x128xf32>
    tpu.vector_store %arg2[%c0_1, %c0_2], %0 {strides = array<i32>} : memref<16x128xf32, #tpu.memory_space<vmem>>, vector<16x128xf32>,
    return
  }
  func.func @transform_0(%arg0: i32) -> (i32, i32) {
    %c0_i32 = arith.constant 0 : i32
    %c0_i32_0 = arith.constant 0 : i32
    return %arg0, %c0_i32 : i32, i32
  }
  func.func @transform_1(%arg0: i32) -> (i32, i32) {
    %c0_i32 = arith.constant 0 : i32
    %c0_i32_0 = arith.constant 0 : i32
    return %arg0, %c0_i32 : i32, i32
  }
}

</mosaic_0001>

<bundles_post_ra>
// kernel: tpu_custom_call.1
= control target key start
LH: loop header
LB: loop body
LE: loop exit
PB: predicated region body
PF: predicated region fallthrough
CT: control target
= control target key end

     0   :  { %6 = vsyncpa [#allocation3], 0  ;;  %s134_s0 = inlined_call_operand.hbm [shape: f32[16,128], index: 0, kind: input, shape index: {}]   ;;  %s135_s1 = inlined_call_operand.hbm [shape: f32[16,128], index: 1, kind: output, shape index: {}]  }
   0x1   :  { %7 = vsyncpa [#allocation4], 0  ;;  %s96_s6 = smov [#allocation2]   ;;  %s48_s10 = scalar_lea.hbm %s134_s0, 256 }
   0x2   :  { %s13_s7 = sshll.u32 %s96_s6, 4  ;;  %p49_p0 = scmp.ne.s32.totalorder %s134_s0, %s48_s10  ;;  %s14_s7 = int_to_ptr.vmem [resolvable:$true] %s13_s7 }
   0x3   :  { %p52_p1 = scmp.lt.u32.totalorder %s48_s10, %s134_s0 }
   0x5   :  { %p54_p2 = pnand %p52_p1, %p49_p0 }
   0x7   :  { %57 = shalt.err (!%p54_p2)
}
   0x8   :  { %s58_s15 = scalar_lea.vmem %s14_s7, 256  ;;  %p63_p4 = scmp.lt.s32.totalorder %s14_s7, %s14_s7 }
   0x9   :  { %p59_p3 = scmp.ne.s32.totalorder %s14_s7, %s58_s15  ;;  %p64_p5 = scmp.lt.s32.totalorder %s58_s15, %s58_s15 }
   0xb   :  { %p65_p6 = por %p64_p5, %p63_p4 }
   0xd   :  { %p66_p7 = pnand %p65_p6, %p59_p3 }
   0xf   :  { %69 = shalt.err (!%p66_p7)
}
  0x10   :  { %s97_s16 = smov 128   ;;  %s98_s17 = smov 8  }
  0x11   :  { %19 = dma.hbm_to_vmem [thread:$0]  %s134_s0, 256, %s14_s7, [#allocation3], %s97_s16, %s97_s16, %s98_s17  }
  0x12   :  { %92 = dma.done.wait [#allocation3], 256  }
  0x13   :  { %93 = vsyncadd [#allocation3], 4294967040  ;;  %s99_s20 = smov [#allocation5]   ;;  %v23_v0 = vld [vmem:[#allocation2] sm:$0xff]  ;;  %v24_v1 = vld [vmem:[#allocation2 + $0x8] sm:$0xff] }
  0x14   :  { %s32_s21 = sshll.u32 %s99_s20, 4  ;;  %25 = vst [vmem:[#allocation5] sm:$0xff] %v23_v0  ;;  %26 = vst [vmem:[#allocation5 + $0x8] sm:$0xff] %v24_v1  ;;  %s33_s21 = int_to_ptr.vmem [resolvable:$true] %s32_s21 }
  0x15   :  { %s70_s22 = scalar_lea.vmem %s33_s21, 256  ;;  %p75_p9 = scmp.lt.s32.totalorder %s33_s21, %s33_s21 }
  0x16   :  { %p71_p8 = scmp.ne.s32.totalorder %s33_s21, %s70_s22  ;;  %p76_p10 = scmp.lt.s32.totalorder %s70_s22, %s70_s22 }
  0x18   :  { %p77_p11 = por %p76_p10, %p75_p9 }
  0x1a   :  { %p78_p12 = pnand %p77_p11, %p71_p8 }
  0x1c   :  { %81 = shalt.err (!%p78_p12)
}
  0x1d   :  { %s82_s0 = scalar_lea.hbm %s135_s1, 256 }
  0x1e   :  { %p83_p13 = scmp.ne.s32.totalorder %s135_s1, %s82_s0  ;;  %p86_p0 = scmp.lt.u32.totalorder %s82_s0, %s135_s1 }
  0x20   :  { %p88_p1 = pnand %p86_p0, %p83_p13 }
  0x22   :  { %91 = shalt.err (!%p88_p1)
}
  0x23   :  { %38 = dma.vmem_to_hbm [thread:$0]  %s33_s21, 256, %s135_s1, [#allocation4], %s97_s16, %s97_s16, %s98_s17  }
  0x24   :  { %94 = dma.done.wait [#allocation4], 256  }
  0x25   :  { %95 = vsyncadd [#allocation4], 4294967040 }
  0x26   :  { %42 = vsyncpa [#allocation3], 1 }
  0x27   :  { %43 = vsyncpa [#allocation4], 1 }

</bundles_post_ra>
